<compile_context>
chip_gen: v7x
topology: tpu7x:2x2x1
jax: 0.10.0
libtpu: 0.0.40
codegen_flags: <defaults>
</compile_context>

<pallas_src>
import functools

import jax
import jax.numpy as jnp
from jax import lax
from jax.experimental import pallas as pl
from jax.experimental.pallas import tpu as pltpu


def _round_up(a, b):
    return (a + b - 1) // b * b


def _num_tensorcores_per_chip():
    # v7x has 2 TensorCores per chip -> split small-row workloads into >= 2
    # "parallel" grid steps; v5e / v6e have 1 TC -> one big block wins
    # (per-step overhead ~0.35us dominates this tiny per-row workload).
    try:
        kind = jax.devices()[0].device_kind.lower()
        if "v7" in kind:
            return 2
    except Exception:
        pass
    return 1


def _dwconv1d_kernel(x_ref, w_ref, o_ref, xpad_ref, *,
                     kernel_size, stride, padding, l_in, l_out, left, rc):
    # x_ref:    (tn, L)            one tile of rows (= batch * out_channel)
    # w_ref:    (tn, K)            per-row depthwise weights (f32, row-aligned)
    # o_ref:    (tn, L_out)        lane-dense output tile, dtype == input dtype
    # xpad_ref: (tn, left+L+pad)   f32 scratch; x staged lane-aligned at `left`
    tn = xpad_ref.shape[0]
    p = padding

    # One-time zero-fill of the halo edges: the scratch persists across grid
    # steps and the edges are never touched by the per-step staging store, so
    # the (masked, lane-sparse) edge stores only run on the first step.
    if p > 0:
        @pl.when(pl.program_id(0) == 0)
        def _():
            zeros_edge = jnp.zeros((tn, p), jnp.float32)
            xpad_ref[:, left - p:left] = zeros_edge
            xpad_ref[:, left + l_in:left + l_in + p] = zeros_edge

    # Lane-aligned bulk staging store (`left` is a multiple of 128 -> plain
    # unmasked vst); single pass over the input, upcast once to f32.
    xpad_ref[:, left:left + l_in] = x_ref[...].astype(jnp.float32)

    base = left - p  # scratch column of tap k == 0 for output position 0

    def row_chunk(c, carry):
        r0 = pl.multiple_of(c * rc, rc)

        def tap(kk):
            # Each tap is read straight from the VMEM scratch (vld slot).
            if stride == 1:
                return xpad_ref[pl.ds(r0, rc), base + kk:base + kk + l_out]
            return xpad_ref[pl.ds(r0, rc),
                            pl.ds(base + kk, l_out, stride=stride)]

        w_tile = w_ref[pl.ds(r0, rc), :]              # (rc, K) — tiny
        # Register-resident accumulator; K taps unrolled; exactly ONE store
        # of the (rc, L_out) chunk at the end (no per-tap o_ref RMW).
        acc = w_tile[:, 0:1] * tap(0)
        for kk in range(1, kernel_size):
            acc = acc + w_tile[:, kk:kk + 1] * tap(kk)
        o_ref[pl.ds(r0, rc), :] = acc.astype(o_ref.dtype)
        return carry

    lax.fori_loop(0, tn // rc, row_chunk, 0)


def depthwise_conv1d(x, weight, *, stride, padding):
    """Depthwise Conv1d matching torch.nn.Conv1d(groups=in_channels, bias=False).

    x: (N, C_in, L) ; weight: (C_out, 1, K) with C_out % C_in == 0.
    Returns (N, C_out, L_out) with the same dtype as x.
    """
    n, c_in, l_in = x.shape
    c_out, _, k = weight.shape
    assert c_out % c_in == 0
    mult = c_out // c_in

    l_pad = l_in + 2 * padding
    l_out = (l_pad - k) // stride + 1
    assert l_out >= 1

    # ---- layout glue (free reshape when mult == 1, as in the module) ------
    # Row r = b * C_out + oc ; PyTorch grouped-conv uses input channel
    # oc // mult for output channel oc.
    if mult == 1:
        x_rows = x.reshape(n * c_in, l_in)
    else:
        x_rows = jnp.repeat(x, mult, axis=1).reshape(n * c_out, l_in)
    w_rows = jnp.tile(weight.reshape(c_out, k).astype(jnp.float32), (n, 1))

    rows = n * c_out
    rows8 = _round_up(rows, 8)

    # Left halo padded to a 128-lane boundary so the bulk staging store of x
    # is lane-aligned; only `padding` lanes of right halo are needed.
    left = _round_up(padding, 128) if padding > 0 else 0
    width = left + l_in + padding

    itemsize = jnp.dtype(x.dtype).itemsize
    # Per-row VMEM: double-buffered x tile + double-buffered out tile
    # + f32 scratch row + double-buffered weight row.
    per_row_bytes = (2 * l_in * itemsize + 2 * l_out * itemsize
                     + 4 * width + 2 * 4 * k)
    # 8 MiB per block keeps the pipeline well inside the scoped-VMEM ceilings
    # of every generation (v5e/v6e: 128 MiB physical / 16-32 MiB default
    # scoped; v7x: 64 MiB physical / 32 MiB scoped).  No artificial row cap:
    # the in-kernel row chunking keeps vreg pressure bounded at any tn.
    budget = 8 * 1024 * 1024
    tn_budget = max(8, (budget // per_row_bytes) // 8 * 8)

    num_tc = _num_tensorcores_per_chip()
    if num_tc > 1:
        # Megacore: at least `num_tc` balanced "parallel" row blocks.
        tn_split = max(8, _round_up(pl.cdiv(rows8, num_tc), 8))
    else:
        tn_split = rows8
    tn = max(8, min(tn_budget, tn_split))
    grid = (pl.cdiv(rows, tn),)
    # NOTE: a partial last block computes on Pallas-padded garbage rows; this
    # is benign because OOB output writes are dropped — do not read o_ref back.

    # Row-chunk size for the in-kernel accumulator: keep the live accumulator
    # to <= 4 vregs (rc * l_out * 4B <= 16 KiB), and rc must divide tn.
    rc = 8
    for cand in (16, 32, 64):
        if tn % cand == 0 and cand * l_out * 4 <= 16 * 1024:
            rc = cand

    kernel = functools.partial(
        _dwconv1d_kernel, kernel_size=k, stride=stride, padding=padding,
        l_in=l_in, l_out=l_out, left=left, rc=rc)

    out_rows = pl.pallas_call(
        kernel,
        out_shape=jax.ShapeDtypeStruct((rows, l_out), x.dtype),
        grid_spec=pltpu.PrefetchScalarGridSpec(
            num_scalar_prefetch=0,
            grid=grid,
            in_specs=[
                pl.BlockSpec((tn, l_in), lambda r: (r, 0)),
                pl.BlockSpec((tn, k), lambda r: (r, 0)),
            ],
            out_specs=pl.BlockSpec((tn, l_out), lambda r: (r, 0)),
            scratch_shapes=[pltpu.VMEM((tn, width), jnp.float32)],
        ),
        compiler_params=pltpu.CompilerParams(
            dimension_semantics=("parallel",),
            vmem_limit_bytes=32 * 1024 * 1024,
        ),
    )(x_rows, w_rows)

    return out_rows.reshape(n, c_out, l_out)


if __name__ == "__main__":
    key = jax.random.PRNGKey(0)

    def check(n, c_in, c_out, k, stride, pad, l, key,
              dtype=jnp.float32, atol=1e-3):
        kx, kw = jax.random.split(key)
        x = jax.random.normal(kx, (n, c_in, l), dtype=jnp.float32)
        w = jax.random.normal(kw, (c_out, 1, k), dtype=jnp.float32) * 0.1
        x_in = x.astype(dtype)
        out = jax.block_until_ready(
            depthwise_conv1d(x_in, w, stride=stride, padding=pad))
        assert out.dtype == x_in.dtype, (out.dtype, x_in.dtype)
        ref = lax.conv_general_dilated(
            x_in.astype(jnp.float32), w,
            window_strides=(stride,),
            padding=((pad, pad),),
            dimension_numbers=("NCH", "OIH", "NCH"),
            feature_group_count=c_in,
        )
        assert out.shape == ref.shape, (out.shape, ref.shape)
        err = float(jnp.max(jnp.abs(out.astype(jnp.float32) - ref)))
        assert err <= atol, err

    k1, k2, k3 = jax.random.split(key, 3)
    # Shapes the Fusion module actually uses: ConvModule(in_channels=3) ->
    # DepthwiseConv1d(3, 3, kernel_size=31, stride=1, padding=15) applied
    # over the hidden axis (small hidden_size = 128 here), batch of 8.
    check(n=8, c_in=3, c_out=3, k=31, stride=1, pad=15, l=128, key=k1)
    # Channel-multiplier > 1 grouped-conv mapping check.
    check(n=4, c_in=4, c_out=8, k=3, stride=1, pad=1, l=128, key=k2)
    # bf16 activations: output dtype now matches input dtype.
    check(n=8, c_in=3, c_out=3, k=31, stride=1, pad=15, l=128, key=k3,
          dtype=jnp.bfloat16, atol=5e-2)

    print("KERNEL_OK")
</pallas_src>

<mosaic_0001>
module attributes {stable_mosaic.version = 11 : i64} {
  func.func @_dwconv1d_kernel(%arg0: i32, %arg1: memref<24x128xf32, #tpu.memory_space<vmem>>, %arg2: memref<24x31xf32, #tpu.memory_space<vmem>>, %arg3: memref<24x128xf32, #tpu.memory_space<vmem>>, %arg4: memref<24x271xf32, #tpu.memory_space<vmem>>) attributes {dimension_semantics = [#tpu.dimension_semantics<parallel>], iteration_bounds = array<i64: 1>, scalar_prefetch = 0 : i64, scratch_operands = 1 : i64, tpu.core_type = #tpu.core_type<tc>, window_params = [{transform_indices = @transform_0, window_bounds = array<i64: 24, 128>}, {transform_indices = @transform_1, window_bounds = array<i64: 24, 31>}, {transform_indices = @transform_2, window_bounds = array<i64: 24, 128>}]} {
    %c0_i32 = arith.constant 0 : i32
    %0 = arith.cmpi eq, %arg0, %c0_i32 : i32
    %1 = arith.extui %0 : i1 to i32
    %c0_i32_0 = arith.constant 0 : i32
    %2 = arith.cmpi ne, %1, %c0_i32_0 : i32
    scf.if %2 {
      %cst = arith.constant 0.000000e+00 : f32
      %6 = vector.broadcast %cst : f32 to vector<24x15xf32>
      %c0_5 = arith.constant 0 : index
      %c113 = arith.constant 113 : index
      %7 = vector.load %arg4[%c0_5, %c113] : memref<24x271xf32, #tpu.memory_space<vmem>>, vector<24x15xf32>
      tpu.vector_store %arg4[%c0_5, %c113], %6 {strides = array<i32>} : memref<24x271xf32, #tpu.memory_space<vmem>>, vector<24x15xf32>,
      %c0_6 = arith.constant 0 : index
      %c256 = arith.constant 256 : index
      %8 = vector.load %arg4[%c0_6, %c256] : memref<24x271xf32, #tpu.memory_space<vmem>>, vector<24x15xf32>
      tpu.vector_store %arg4[%c0_6, %c256], %6 {strides = array<i32>} : memref<24x271xf32, #tpu.memory_space<vmem>>, vector<24x15xf32>,
    } else {
    }
    %c0 = arith.constant 0 : index
    %c0_1 = arith.constant 0 : index
    %3 = vector.load %arg1[%c0, %c0_1] : memref<24x128xf32, #tpu.memory_space<vmem>>, vector<24x128xf32>
    %c0_2 = arith.constant 0 : index
    %c128 = arith.constant 128 : index
    %4 = vector.load %arg4[%c0_2, %c128] : memref<24x271xf32, #tpu.memory_space<vmem>>, vector<24x128xf32>
    tpu.vector_store %arg4[%c0_2, %c128], %3 {strides = array<i32>} : memref<24x271xf32, #tpu.memory_space<vmem>>, vector<24x128xf32>,
    %c0_i32_3 = arith.constant 0 : i32
    %c3_i32 = arith.constant 3 : i32
    %5 = arith.addi %c0_i32_3, %c3_i32 : i32
    %c1_i32 = arith.constant 1 : i32
    scf.for %arg5 = %c0_i32_3 to %5 step %c1_i32  : i32 {
      %c8_i32 = arith.constant 8 : i32
      %6 = arith.muli %arg5, %c8_i32 : i32
      %7 = tpu.assume_multiple %6, 8 : i32
      %8 = arith.index_cast %7 : i32 to index
      %c0_5 = arith.constant 0 : index
      %9 = vector.load %arg2[%8, %c0_5] : memref<24x31xf32, #tpu.memory_space<vmem>>, vector<8x31xf32>
      %10 = vector.extract_strided_slice %9 {offsets = [0, 0], sizes = [8, 1], strides = [1, 1]} : vector<8x31xf32> to vector<8x1xf32>
      %11 = arith.index_cast %7 : i32 to index
      %c113 = arith.constant 113 : index
      %12 = vector.load %arg4[%11, %c113] : memref<24x271xf32, #tpu.memory_space<vmem>>, vector<8x128xf32>
      %13 = vector.broadcast %10 : vector<8x1xf32> to vector<8x128xf32>
      %14 = arith.mulf %13, %12 : vector<8x128xf32>
      %15 = vector.extract_strided_slice %9 {offsets = [0, 1], sizes = [8, 1], strides = [1, 1]} : vector<8x31xf32> to vector<8x1xf32>
      %16 = arith.index_cast %7 : i32 to index
      %c114 = arith.constant 114 : index
      %17 = vector.load %arg4[%16, %c114] : memref<24x271xf32, #tpu.memory_space<vmem>>, vector<8x128xf32>
      %18 = vector.broadcast %15 : vector<8x1xf32> to vector<8x128xf32>
      %19 = arith.mulf %18, %17 : vector<8x128xf32>
      %20 = arith.addf %14, %19 : vector<8x128xf32>
      %21 = vector.extract_strided_slice %9 {offsets = [0, 2], sizes = [8, 1], strides = [1, 1]} : vector<8x31xf32> to vector<8x1xf32>
      %22 = arith.index_cast %7 : i32 to index
      %c115 = arith.constant 115 : index
      %23 = vector.load %arg4[%22, %c115] : memref<24x271xf32, #tpu.memory_space<vmem>>, vector<8x128xf32>
      %24 = vector.broadcast %21 : vector<8x1xf32> to vector<8x128xf32>
      %25 = arith.mulf %24, %23 : vector<8x128xf32>
      %26 = arith.addf %20, %25 : vector<8x128xf32>
      %27 = vector.extract_strided_slice %9 {offsets = [0, 3], sizes = [8, 1], strides = [1, 1]} : vector<8x31xf32> to vector<8x1xf32>
      %28 = arith.index_cast %7 : i32 to index
      %c116 = arith.constant 116 : index
      %29 = vector.load %arg4[%28, %c116] : memref<24x271xf32, #tpu.memory_space<vmem>>, vector<8x128xf32>
      %30 = vector.broadcast %27 : vector<8x1xf32> to vector<8x128xf32>
      %31 = arith.mulf %30, %29 : vector<8x128xf32>
      %32 = arith.addf %26, %31 : vector<8x128xf32>
      %33 = vector.extract_strided_slice %9 {offsets = [0, 4], sizes = [8, 1], strides = [1, 1]} : vector<8x31xf32> to vector<8x1xf32>
      %34 = arith.index_cast %7 : i32 to index
      %c117 = arith.constant 117 : index
      %35 = vector.load %arg4[%34, %c117] : memref<24x271xf32, #tpu.memory_space<vmem>>, vector<8x128xf32>
      %36 = vector.broadcast %33 : vector<8x1xf32> to vector<8x128xf32>
      %37 = arith.mulf %36, %35 : vector<8x128xf32>
      %38 = arith.addf %32, %37 : vector<8x128xf32>
      %39 = vector.extract_strided_slice %9 {offsets = [0, 5], sizes = [8, 1], strides = [1, 1]} : vector<8x31xf32> to vector<8x1xf32>
      %40 = arith.index_cast %7 : i32 to index
      %c118 = arith.constant 118 : index
      %41 = vector.load %arg4[%40, %c118] : memref<24x271xf32, #tpu.memory_space<vmem>>, vector<8x128xf32>
      %42 = vector.broadcast %39 : vector<8x1xf32> to vector<8x128xf32>
      %43 = arith.mulf %42, %41 : vector<8x128xf32>
      %44 = arith.addf %38, %43 : vector<8x128xf32>
      %45 = vector.extract_strided_slice %9 {offsets = [0, 6], sizes = [8, 1], strides = [1, 1]} : vector<8x31xf32> to vector<8x1xf32>
      %46 = arith.index_cast %7 : i32 to index
      %c119 = arith.constant 119 : index
      %47 = vector.load %arg4[%46, %c119] : memref<24x271xf32, #tpu.memory_space<vmem>>, vector<8x128xf32>
      %48 = vector.broadcast %45 : vector<8x1xf32> to vector<8x128xf32>
      %49 = arith.mulf %48, %47 : vector<8x128xf32>
      %50 = arith.addf %44, %49 : vector<8x128xf32>
      %51 = vector.extract_strided_slice %9 {offsets = [0, 7], sizes = [8, 1], strides = [1, 1]} : vector<8x31xf32> to vector<8x1xf32>
      %52 = arith.index_cast %7 : i32 to index
      %c120 = arith.constant 120 : index
      %53 = vector.load %arg4[%52, %c120] : memref<24x271xf32, #tpu.memory_space<vmem>>, vector<8x128xf32>
      %54 = vector.broadcast %51 : vector<8x1xf32> to vector<8x128xf32>
      %55 = arith.mulf %54, %53 : vector<8x128xf32>
      %56 = arith.addf %50, %55 : vector<8x128xf32>
      %57 = vector.extract_strided_slice %9 {offsets = [0, 8], sizes = [8, 1], strides = [1, 1]} : vector<8x31xf32> to vector<8x1xf32>
      %58 = arith.index_cast %7 : i32 to index
      %c121 = arith.constant 121 : index
      %59 = vector.load %arg4[%58, %c121] : memref<24x271xf32, #tpu.memory_space<vmem>>, vector<8x128xf32>
      %60 = vector.broadcast %57 : vector<8x1xf32> to vector<8x128xf32>
      %61 = arith.mulf %60, %59 : vector<8x128xf32>
      %62 = arith.addf %56, %61 : vector<8x128xf32>
      %63 = vector.extract_strided_slice %9 {offsets = [0, 9], sizes = [8, 1], strides = [1, 1]} : vector<8x31xf32> to vector<8x1xf32>
      %64 = arith.index_cast %7 : i32 to index
      %c122 = arith.constant 122 : index
      %65 = vector.load %arg4[%64, %c122] : memref<24x271xf32, #tpu.memory_space<vmem>>, vector<8x128xf32>
      %66 = vector.broadcast %63 : vector<8x1xf32> to vector<8x128xf32>
      %67 = arith.mulf %66, %65 : vector<8x128xf32>
      %68 = arith.addf %62, %67 : vector<8x128xf32>
      %69 = vector.extract_strided_slice %9 {offsets = [0, 10], sizes = [8, 1], strides = [1, 1]} : vector<8x31xf32> to vector<8x1xf32>
      %70 = arith.index_cast %7 : i32 to index
      %c123 = arith.constant 123 : index
      %71 = vector.load %arg4[%70, %c123] : memref<24x271xf32, #tpu.memory_space<vmem>>, vector<8x128xf32>
      %72 = vector.broadcast %69 : vector<8x1xf32> to vector<8x128xf32>
      %73 = arith.mulf %72, %71 : vector<8x128xf32>
      %74 = arith.addf %68, %73 : vector<8x128xf32>
      %75 = vector.extract_strided_slice %9 {offsets = [0, 11], sizes = [8, 1], strides = [1, 1]} : vector<8x31xf32> to vector<8x1xf32>
      %76 = arith.index_cast %7 : i32 to index
      %c124 = arith.constant 124 : index
      %77 = vector.load %arg4[%76, %c124] : memref<24x271xf32, #tpu.memory_space<vmem>>, vector<8x128xf32>
      %78 = vector.broadcast %75 : vector<8x1xf32> to vector<8x128xf32>
      %79 = arith.mulf %78, %77 : vector<8x128xf32>
      %80 = arith.addf %74, %79 : vector<8x128xf32>
      %81 = vector.extract_strided_slice %9 {offsets = [0, 12], sizes = [8, 1], strides = [1, 1]} : vector<8x31xf32> to vector<8x1xf32>
      %82 = arith.index_cast %7 : i32 to index
      %c125 = arith.constant 125 : index
      %83 = vector.load %arg4[%82, %c125] : memref<24x271xf32, #tpu.memory_space<vmem>>, vector<8x128xf32>
      %84 = vector.broadcast %81 : vector<8x1xf32> to vector<8x128xf32>
      %85 = arith.mulf %84, %83 : vector<8x128xf32>
      %86 = arith.addf %80, %85 : vector<8x128xf32>
      %87 = vector.extract_strided_slice %9 {offsets = [0, 13], sizes = [8, 1], strides = [1, 1]} : vector<8x31xf32> to vector<8x1xf32>
      %88 = arith.index_cast %7 : i32 to index
      %c126 = arith.constant 126 : index
      %89 = vector.load %arg4[%88, %c126] : memref<24x271xf32, #tpu.memory_space<vmem>>, vector<8x128xf32>
      %90 = vector.broadcast %87 : vector<8x1xf32> to vector<8x128xf32>
      %91 = arith.mulf %90, %89 : vector<8x128xf32>
      %92 = arith.addf %86, %91 : vector<8x128xf32>
      %93 = vector.extract_strided_slice %9 {offsets = [0, 14], sizes = [8, 1], strides = [1, 1]} : vector<8x31xf32> to vector<8x1xf32>
      %94 = arith.index_cast %7 : i32 to index
      %c127 = arith.constant 127 : index
      %95 = vector.load %arg4[%94, %c127] : memref<24x271xf32, #tpu.memory_space<vmem>>, vector<8x128xf32>
      %96 = vector.broadcast %93 : vector<8x1xf32> to vector<8x128xf32>
      %97 = arith.mulf %96, %95 : vector<8x128xf32>
      %98 = arith.addf %92, %97 : vector<8x128xf32>
      %99 = vector.extract_strided_slice %9 {offsets = [0, 15], sizes = [8, 1], strides = [1, 1]} : vector<8x31xf32> to vector<8x1xf32>
      %100 = arith.index_cast %7 : i32 to index
      %c128_6 = arith.constant 128 : index
      %101 = vector.load %arg4[%100, %c128_6] : memref<24x271xf32, #tpu.memory_space<vmem>>, vector<8x128xf32>
      %102 = vector.broadcast %99 : vector<8x1xf32> to vector<8x128xf32>
      %103 = arith.mulf %102, %101 : vector<8x128xf32>
      %104 = arith.addf %98, %103 : vector<8x128xf32>
      %105 = vector.extract_strided_slice %9 {offsets = [0, 16], sizes = [8, 1], strides = [1, 1]} : vector<8x31xf32> to vector<8x1xf32>
      %106 = arith.index_cast %7 : i32 to index
      %c129 = arith.constant 129 : index
      %107 = vector.load %arg4[%106, %c129] : memref<24x271xf32, #tpu.memory_space<vmem>>, vector<8x128xf32>
      %108 = vector.broadcast %105 : vector<8x1xf32> to vector<8x128xf32>
      %109 = arith.mulf %108, %107 : vector<8x128xf32>
      %110 = arith.addf %104, %109 : vector<8x128xf32>
      %111 = vector.extract_strided_slice %9 {offsets = [0, 17], sizes = [8, 1], strides = [1, 1]} : vector<8x31xf32> to vector<8x1xf32>
      %112 = arith.index_cast %7 : i32 to index
      %c130 = arith.constant 130 : index
      %113 = vector.load %arg4[%112, %c130] : memref<24x271xf32, #tpu.memory_space<vmem>>, vector<8x128xf32>
      %114 = vector.broadcast %111 : vector<8x1xf32> to vector<8x128xf32>
      %115 = arith.mulf %114, %113 : vector<8x128xf32>
      %116 = arith.addf %110, %115 : vector<8x128xf32>
      %117 = vector.extract_strided_slice %9 {offsets = [0, 18], sizes = [8, 1], strides = [1, 1]} : vector<8x31xf32> to vector<8x1xf32>
      %118 = arith.index_cast %7 : i32 to index
      %c131 = arith.constant 131 : index
      %119 = vector.load %arg4[%118, %c131] : memref<24x271xf32, #tpu.memory_space<vmem>>, vector<8x128xf32>
      %120 = vector.broadcast %117 : vector<8x1xf32> to vector<8x128xf32>
      %121 = arith.mulf %120, %119 : vector<8x128xf32>
      %122 = arith.addf %116, %121 : vector<8x128xf32>
      %123 = vector.extract_strided_slice %9 {offsets = [0, 19], sizes = [8, 1], strides = [1, 1]} : vector<8x31xf32> to vector<8x1xf32>
      %124 = arith.index_cast %7 : i32 to index
      %c132 = arith.constant 132 : index
      %125 = vector.load %arg4[%124, %c132] : memref<24x271xf32, #tpu.memory_space<vmem>>, vector<8x128xf32>
      %126 = vector.broadcast %123 : vector<8x1xf32> to vector<8x128xf32>
      %127 = arith.mulf %126, %125 : vector<8x128xf32>
      %128 = arith.addf %122, %127 : vector<8x128xf32>
      %129 = vector.extract_strided_slice %9 {offsets = [0, 20], sizes = [8, 1], strides = [1, 1]} : vector<8x31xf32> to vector<8x1xf32>
      %130 = arith.index_cast %7 : i32 to index
      %c133 = arith.constant 133 : index
      %131 = vector.load %arg4[%130, %c133] : memref<24x271xf32, #tpu.memory_space<vmem>>, vector<8x128xf32>
      %132 = vector.broadcast %129 : vector<8x1xf32> to vector<8x128xf32>
      %133 = arith.mulf %132, %131 : vector<8x128xf32>
      %134 = arith.addf %128, %133 : vector<8x128xf32>
      %135 = vector.extract_strided_slice %9 {offsets = [0, 21], sizes = [8, 1], strides = [1, 1]} : vector<8x31xf32> to vector<8x1xf32>
      %136 = arith.index_cast %7 : i32 to index
      %c134 = arith.constant 134 : index
      %137 = vector.load %arg4[%136, %c134] : memref<24x271xf32, #tpu.memory_space<vmem>>, vector<8x128xf32>
      %138 = vector.broadcast %135 : vector<8x1xf32> to vector<8x128xf32>
      %139 = arith.mulf %138, %137 : vector<8x128xf32>
      %140 = arith.addf %134, %139 : vector<8x128xf32>
      %141 = vector.extract_strided_slice %9 {offsets = [0, 22], sizes = [8, 1], strides = [1, 1]} : vector<8x31xf32> to vector<8x1xf32>
      %142 = arith.index_cast %7 : i32 to index
      %c135 = arith.constant 135 : index
      %143 = vector.load %arg4[%142, %c135] : memref<24x271xf32, #tpu.memory_space<vmem>>, vector<8x128xf32>
      %144 = vector.broadcast %141 : vector<8x1xf32> to vector<8x128xf32>
      %145 = arith.mulf %144, %143 : vector<8x128xf32>
      %146 = arith.addf %140, %145 : vector<8x128xf32>
      %147 = vector.extract_strided_slice %9 {offsets = [0, 23], sizes = [8, 1], strides = [1, 1]} : vector<8x31xf32> to vector<8x1xf32>
      %148 = arith.index_cast %7 : i32 to index
      %c136 = arith.constant 136 : index
      %149 = vector.load %arg4[%148, %c136] : memref<24x271xf32, #tpu.memory_space<vmem>>, vector<8x128xf32>
      %150 = vector.broadcast %147 : vector<8x1xf32> to vector<8x128xf32>
      %151 = arith.mulf %150, %149 : vector<8x128xf32>
      %152 = arith.addf %146, %151 : vector<8x128xf32>
      %153 = vector.extract_strided_slice %9 {offsets = [0, 24], sizes = [8, 1], strides = [1, 1]} : vector<8x31xf32> to vector<8x1xf32>
      %154 = arith.index_cast %7 : i32 to index
      %c137 = arith.constant 137 : index
      %155 = vector.load %arg4[%154, %c137] : memref<24x271xf32, #tpu.memory_space<vmem>>, vector<8x128xf32>
      %156 = vector.broadcast %153 : vector<8x1xf32> to vector<8x128xf32>
      %157 = arith.mulf %156, %155 : vector<8x128xf32>
      %158 = arith.addf %152, %157 : vector<8x128xf32>
      %159 = vector.extract_strided_slice %9 {offsets = [0, 25], sizes = [8, 1], strides = [1, 1]} : vector<8x31xf32> to vector<8x1xf32>
      %160 = arith.index_cast %7 : i32 to index
      %c138 = arith.constant 138 : index
      %161 = vector.load %arg4[%160, %c138] : memref<24x271xf32, #tpu.memory_space<vmem>>, vector<8x128xf32>
      %162 = vector.broadcast %159 : vector<8x1xf32> to vector<8x128xf32>
      %163 = arith.mulf %162, %161 : vector<8x128xf32>
      %164 = arith.addf %158, %163 : vector<8x128xf32>
      %165 = vector.extract_strided_slice %9 {offsets = [0, 26], sizes = [8, 1], strides = [1, 1]} : vector<8x31xf32> to vector<8x1xf32>
      %166 = arith.index_cast %7 : i32 to index
      %c139 = arith.constant 139 : index
      %167 = vector.load %arg4[%166, %c139] : memref<24x271xf32, #tpu.memory_space<vmem>>, vector<8x128xf32>
      %168 = vector.broadcast %165 : vector<8x1xf32> to vector<8x128xf32>
      %169 = arith.mulf %168, %167 : vector<8x128xf32>
      %170 = arith.addf %164, %169 : vector<8x128xf32>
      %171 = vector.extract_strided_slice %9 {offsets = [0, 27], sizes = [8, 1], strides = [1, 1]} : vector<8x31xf32> to vector<8x1xf32>
      %172 = arith.index_cast %7 : i32 to index
      %c140 = arith.constant 140 : index
      %173 = vector.load %arg4[%172, %c140] : memref<24x271xf32, #tpu.memory_space<vmem>>, vector<8x128xf32>
      %174 = vector.broadcast %171 : vector<8x1xf32> to vector<8x128xf32>
      %175 = arith.mulf %174, %173 : vector<8x128xf32>
      %176 = arith.addf %170, %175 : vector<8x128xf32>
      %177 = vector.extract_strided_slice %9 {offsets = [0, 28], sizes = [8, 1], strides = [1, 1]} : vector<8x31xf32> to vector<8x1xf32>
      %178 = arith.index_cast %7 : i32 to index
      %c141 = arith.constant 141 : index
      %179 = vector.load %arg4[%178, %c141] : memref<24x271xf32, #tpu.memory_space<vmem>>, vector<8x128xf32>
      %180 = vector.broadcast %177 : vector<8x1xf32> to vector<8x128xf32>
      %181 = arith.mulf %180, %179 : vector<8x128xf32>
      %182 = arith.addf %176, %181 : vector<8x128xf32>
      %183 = vector.extract_strided_slice %9 {offsets = [0, 29], sizes = [8, 1], strides = [1, 1]} : vector<8x31xf32> to vector<8x1xf32>
      %184 = arith.index_cast %7 : i32 to index
      %c142 = arith.constant 142 : index
      %185 = vector.load %arg4[%184, %c142] : memref<24x271xf32, #tpu.memory_space<vmem>>, vector<8x128xf32>
      %186 = vector.broadcast %183 : vector<8x1xf32> to vector<8x128xf32>
      %187 = arith.mulf %186, %185 : vector<8x128xf32>
      %188 = arith.addf %182, %187 : vector<8x128xf32>
      %189 = vector.extract_strided_slice %9 {offsets = [0, 30], sizes = [8, 1], strides = [1, 1]} : vector<8x31xf32> to vector<8x1xf32>
      %190 = arith.index_cast %7 : i32 to index
      %c143 = arith.constant 143 : index
      %191 = vector.load %arg4[%190, %c143] : memref<24x271xf32, #tpu.memory_space<vmem>>, vector<8x128xf32>
      %192 = vector.broadcast %189 : vector<8x1xf32> to vector<8x128xf32>
      %193 = arith.mulf %192, %191 : vector<8x128xf32>
      %194 = arith.addf %188, %193 : vector<8x128xf32>
      %195 = arith.index_cast %7 : i32 to index
      %c0_7 = arith.constant 0 : index
      %196 = vector.load %arg3[%195, %c0_7] : memref<24x128xf32, #tpu.memory_space<vmem>>, vector<8x128xf32>
      tpu.vector_store %arg3[%195, %c0_7], %194 {strides = array<i32>} : memref<24x128xf32, #tpu.memory_space<vmem>>, vector<8x128xf32>,
    }
    %c3_i32_4 = arith.constant 3 : i32
    return
  }
  func.func @transform_0(%arg0: i32) -> (i32, i32) {
    %c0_i32 = arith.constant 0 : i32
    %c0_i32_0 = arith.constant 0 : i32
    return %arg0, %c0_i32 : i32, i32
  }
  func.func @transform_1(%arg0: i32) -> (i32, i32) {
    %c0_i32 = arith.constant 0 : i32
    %c0_i32_0 = arith.constant 0 : i32
    return %arg0, %c0_i32 : i32, i32
  }
  func.func @transform_2(%arg0: i32) -> (i32, i32) {
    %c0_i32 = arith.constant 0 : i32
    %c0_i32_0 = arith.constant 0 : i32
    return %arg0, %c0_i32 : i32, i32
  }
}

</mosaic_0001>

<bundles_post_ra>
// kernel: tpu_custom_call.1
= control target key start
LH: loop header
LB: loop body
LE: loop exit
PB: predicated region body
PF: predicated region fallthrough
CT: control target
= control target key end

     0   :  { %7 = vsyncpa [#allocation4], 0  ;;  %s1141_s0 = inlined_call_operand.hbm [shape: f32[24,128], index: 0, kind: input, shape index: {}]   ;;  %s1142_s1 = inlined_call_operand.hbm [shape: f32[24,31], index: 1, kind: input, shape index: {}]   ;;  %s1143_s2 = inlined_call_operand.hbm [shape: f32[24,128], index: 2, kind: output, shape index: {}]  }
   0x1   :  { %8 = vsyncpa [#allocation7], 0 }
   0x2   :  { %9 = vsyncpa [#allocation5], 0  ;;  %s846_s9 = smov [#allocation3]   ;;  %s766_s13 = scalar_lea.hbm %s1141_s0, 384 }
   0x3   :  { %s15_s10 = sshll.u32 %s846_s9, 4  ;;  %p767_p0 = scmp.ne.s32.totalorder %s1141_s0, %s766_s13  ;;  %s16_s10 = int_to_ptr.vmem [resolvable:$true] %s15_s10 }
   0x4   :  { %p770_p1 = scmp.lt.u32.totalorder %s766_s13, %s1141_s0 }
   0x6   :  { %p772_p2 = pnand %p770_p1, %p767_p0 }
   0x8   :  { %775 = shalt.err (!%p772_p2)
}
   0x9   :  { %s776_s18 = scalar_lea.vmem %s16_s10, 384  ;;  %p781_p4 = scmp.lt.s32.totalorder %s16_s10, %s16_s10 }
   0xa   :  { %p777_p3 = scmp.ne.s32.totalorder %s16_s10, %s776_s18  ;;  %p782_p5 = scmp.lt.s32.totalorder %s776_s18, %s776_s18 }
   0xc   :  { %p783_p6 = por %p782_p5, %p781_p4 }
   0xe   :  { %p784_p7 = pnand %p783_p6, %p777_p3 }
  0x10   :  { %787 = shalt.err (!%p784_p7)
}
  0x11   :  { %s847_s19 = smov 128   ;;  %s848_s20 = smov 8  }
  0x12   :  { %21 = dma.hbm_to_vmem [thread:$0]  %s1141_s0, 384, %s16_s10, [#allocation4], %s847_s19, %s847_s19, %s848_s20  }
  0x13   :  { %s849_s23 = smov [#allocation6]   ;;  %s788_s27 = scalar_lea.hbm %s1142_s1, 384 }
  0x14   :  { %s27_s24 = sshll.u32 %s849_s23, 4  ;;  %p789_p8 = scmp.ne.s32.totalorder %s1142_s1, %s788_s27  ;;  %s28_s24 = int_to_ptr.vmem [resolvable:$true] %s27_s24 }
  0x15   :  { %p792_p9 = scmp.lt.u32.totalorder %s788_s27, %s1142_s1 }
  0x17   :  { %p794_p10 = pnand %p792_p9, %p789_p8 }
  0x19   :  { %797 = shalt.err (!%p794_p10)
}
  0x1a   :  { %s798_s4 = scalar_lea.vmem %s28_s24, 384  ;;  %p803_p12 = scmp.lt.s32.totalorder %s28_s24, %s28_s24 }
  0x1b   :  { %p799_p11 = scmp.ne.s32.totalorder %s28_s24, %s798_s4  ;;  %p804_p13 = scmp.lt.s32.totalorder %s798_s4, %s798_s4 }
  0x1d   :  { %p805_p0 = por %p804_p13, %p803_p12 }
  0x1f   :  { %p806_p1 = pnand %p805_p0, %p799_p11 }
  0x21   :  { %809 = shalt.err (!%p806_p1)
}
  0x22   :  { %33 = dma.hbm_to_vmem [thread:$0]  %s1142_s1, 384, %s28_s24, [#allocation7], %s847_s19, %s847_s19, %s848_s20  }
  0x23   :  { %836 = dma.done.wait [#allocation4], 384  }
  0x24   :  { %837 = vsyncadd [#allocation4], 4294966912 }
  0x25   :  { %838 = dma.done.wait [#allocation7], 384  }
  0x26   :  { %839 = vsyncadd [#allocation7], 4294966912  ;;  %vm44_vm0 = vcmask 1048456   ;;  %vm48_vm1 = vcmask 121856   ;;  %v850_v0 = vmov 0.0   ;;  %v52_v1 = vld [vmem:[#allocation3] sm:$0xff] }
  0x27   :  { %45 = vst.msk [vmem:[#allocation2] sm:$0xff] %vm44_vm0, %v850_v0  ;;  %46 = vst.msk [vmem:[#allocation2 + $0x18] sm:$0xff] %vm44_vm0, %v850_v0  ;;  %v53_v2 = vld [vmem:[#allocation3 + $0x8] sm:$0xff]  ;;  %v54_v3 = vld [vmem:[#allocation3 + $0x10] sm:$0xff]  ;;  %s962_s1 = smov 0  }
  0x28   :  { %47 = vst.msk [vmem:[#allocation2 + $0x30] sm:$0xff] %vm44_vm0, %v850_v0  ;;  %55 = vst [vmem:[#allocation2 + $0x8] sm:$0xff] %v52_v1 }
  0x29   :  { %49 = vst.msk [vmem:[#allocation2 + $0x10] sm:$0xff] %vm48_vm1, %v850_v0  ;;  %50 = vst.msk [vmem:[#allocation2 + $0x28] sm:$0xff] %vm48_vm1, %v850_v0 }
  0x2a   :  { %51 = vst.msk [vmem:[#allocation2 + $0x40] sm:$0xff] %vm48_vm1, %v850_v0  ;;  %56 = vst [vmem:[#allocation2 + $0x20] sm:$0xff] %v53_v2 }
  0x2b   :  { %57 = vst [vmem:[#allocation2 + $0x38] sm:$0xff] %v54_v3 }
  0x2c LB: > { %v851_v4 = vmov 1   ;;  %v852_v5 = vmov 3   ;;  %s968_s6 = sshll.u32 %s844_s1, 3  ;;  %v853_v7 = vmov 2   ;;  %v854_v8 = vmov 4   ;;  %s882_s11 = smov 127   ;;  %s844_s1 = sphi %s962_s1, %s63_s1  }
  0x2d   : > { %735 = vset.pattern.permute.xlu0 %v851_v4  ;;  %737 = vset.pattern.permute.xlu1 %v852_v5  ;;  %s65_s7 = scalar_lea.vmem [#allocation6], %s968_s6  ;;  %v855_v9 = vmov 5   ;;  %v856_v10 = vmov 6   ;;  %v857_v11 = vmov 7   ;;  %v858_v12 = vmov 9   ;;  %s67_s8 = sshra.s32 %s968_s6, 3 }
  0x2e   : > { %v971_v6 = vld [vmem:[%s65_s7] sm:$0xff]  ;;  %v859_v13 = vmov 8   ;;  %v860_v14 = vmov 12   ;;  %v861_v15 = vmov 10   ;;  %v862_v16 = vmov 15   ;;  %s658_s9 = smul.u32 24, %s67_s8 }
  0x2f   : > { %82 = vperm.xlu0 %735, %v971_v6   ;;  %118 = vperm.xlu1 %737, %v971_v6   ;;  %v863_v17 = vmov 11   ;;  %v864_v18 = vmov 18   ;;  %v865_v19 = vmov 13   ;;  %v866_v20 = vmov 21   ;;  %s883_s12 = smov 126   ;;  %s884_s13 = smov 125  }
  0x30   : > { %v867_v21 = vmov 14   ;;  %v868_v22 = vmov 24   ;;  %v869_v23 = vmov 16   ;;  %v870_v24 = vmov 27   ;;  %s1005_s10 = scalar_lea.vmem [#allocation2], %s658_s9  ;;  %s885_s14 = smov 124  }
  0x31   : > { %v871_v25 = vmov 17   ;;  %v872_v26 = vmov 30   ;;  %v873_v27 = vmov 19   ;;  %v874_v28 = vmov 20   ;;  %s886_s15 = smov 123   ;;  %s887_s16 = smov 122  }
  0x32   : > { %v875_v29 = vmov 22   ;;  %v876_v30 = vmov 23   ;;  %v877_v31 = vmov 25   ;;  %v878_v32 = vmov 26   ;;  %v1008_v36 = vld [vmem:[%s1005_s10] sm:$0xff]  ;;  %v1011_v37 = vld [vmem:[%s1005_s10 + $0x8] sm:$0xff] }
  0x33   : > { %736 = vset.pattern.permute.xlu0 %v853_v7  ;;  %738 = vset.pattern.permute.xlu1 %v854_v8  ;;  %v879_v33 = vmov 28   ;;  %v880_v34 = vmov 29   ;;  %v881_v35 = vmov 0   ;;  %s888_s17 = smov 121   ;;  %s889_s18 = smov 120   ;;  %vm93_vm2 = vcmask 1039360  }
  0x34   : > { %100 = vperm.xlu0 %736, %v971_v6   ;;  %136 = vperm.xlu1 %738, %v971_v6   ;;  %s890_s21 = smov 119   ;;  %s891_s22 = smov 118   ;;  %vm111_vm3 = vcmask 1031168   ;;  %vm129_vm4 = vcmask 1022976   ;;  %vm147_vm5 = vcmask 1014784   ;;  %vm165_vm6 = vcmask 1006592  }
  0x35   : > { %s892_s23 = smov 117   ;;  %s893_s24 = smov 116   ;;  %vm183_vm7 = vcmask 998400   ;;  %vm201_vm8 = vcmask 990208   ;;  %vm219_vm9 = vcmask 982016   ;;  %vm237_vm10 = vcmask 973824  }
  0x36   : > { %s894_s25 = smov 115   ;;  %s895_s26 = smov 114   ;;  %vm255_vm11 = vcmask 965632   ;;  %vm273_vm12 = vcmask 957440   ;;  %vm291_vm13 = vcmask 949248   ;;  %vm309_vm14 = vcmask 941056  }
  0x37   : > { %s896_s27 = smov 112   ;;  %s897_s28 = smov 113   ;;  %vm327_vm15 = vcmask 932864   ;;  %vm358_vm0 = vcmask 916480  }
  0x38   : > { %739 = vset.pattern.permute.xlu1 %v855_v9  ;;  %740 = vset.pattern.permute.xlu0 %v856_v10  ;;  %s898_s29 = smov 111   ;;  %s899_s30 = smov 110  }
  0x39   : > { %154 = vperm.xlu1 %739, %v971_v6   ;;  %172 = vperm.xlu0 %740, %v971_v6   ;;  %s900_s3 = smov 109   ;;  %s901_s4 = smov 108  }
  0x3a   : > { %s902_s0 = smov 107   ;;  %s903_s5 = smov 106  }
  0x3b   : > { %s904_s7 = smov 105   ;;  %s905_s8 = smov 104  }
  0x3c   : > { %s906_s9 = smov 103   ;;  %s63_s1 = sadd.s32 1, %s844_s1  }
  0x3d   : > { %741 = vset.pattern.permute.xlu1 %v857_v11  ;;  %743 = vset.pattern.permute.xlu0 %v858_v12  ;;  %p60_p2 = scmp.ge.s32.totalorder %s63_s1, 3  }
  0x3e   : > { %190 = vperm.xlu1 %741, %v971_v6   ;;  %226 = vperm.xlu0 %743, %v971_v6  }
  0x42   : > { %742 = vset.pattern.permute.xlu1 %v859_v13  ;;  %746 = vset.pattern.permute.xlu0 %v860_v14 }
  0x43   : > { %208 = vperm.xlu1 %742, %v971_v6   ;;  %280 = vperm.xlu0 %746, %v971_v6  }
  0x47   : > { %744 = vset.pattern.permute.xlu1 %v861_v15  ;;  %749 = vset.pattern.permute.xlu0 %v862_v16 }
  0x48   : > { %244 = vperm.xlu1 %744, %v971_v6   ;;  %334 = vperm.xlu0 %749, %v971_v6  }
  0x4c   : > { %745 = vset.pattern.permute.xlu1 %v863_v17  ;;  %752 = vset.pattern.permute.xlu0 %v864_v18 }
  0x4d   : > { %262 = vperm.xlu1 %745, %v971_v6   ;;  %383 = vperm.xlu0 %752, %v971_v6  }
  0x51   : > { %747 = vset.pattern.permute.xlu1 %v865_v19  ;;  %755 = vset.pattern.permute.xlu0 %v866_v20  ;;  %v1044_v20 = vld [vmem:[%s1005_s10 + $0x10] sm:$0xff]  ;;  %s907_s10 = smov 102  }
  0x52   : > { %298 = vperm.xlu1 %747, %v971_v6   ;;  %437 = vperm.xlu0 %755, %v971_v6  }
  0x56   : > { %748 = vset.pattern.permute.xlu1 %v867_v21  ;;  %758 = vset.pattern.permute.xlu0 %v868_v22 }
  0x57   : > { %316 = vperm.xlu1 %748, %v971_v6   ;;  %491 = vperm.xlu0 %758, %v971_v6  }
  0x5b   : > { %750 = vset.pattern.permute.xlu1 %v869_v23  ;;  %761 = vset.pattern.permute.xlu0 %v870_v24 }
  0x5c   : > { %347 = vperm.xlu1 %750, %v971_v6   ;;  %545 = vperm.xlu0 %761, %v971_v6  }
  0x60   : > { %751 = vset.pattern.permute.xlu1 %v871_v25  ;;  %764 = vset.pattern.permute.xlu0 %v872_v26 }
  0x61   : > { %365 = vperm.xlu1 %751, %v971_v6   ;;  %599 = vperm.xlu0 %764, %v971_v6  }
  0x65   : > { %753 = vset.pattern.permute.xlu1 %v873_v27 }
  0x66   : > { %401 = vperm.xlu1 %753, %v971_v6  }
  0x6a   : > { %754 = vset.pattern.permute.xlu1 %v874_v28 }
  0x6b   : > { %419 = vperm.xlu1 %754, %v971_v6  }
  0x6f   : > { %756 = vset.pattern.permute.xlu1 %v875_v29 }
  0x70   : > { %455 = vperm.xlu1 %756, %v971_v6  }
  0x74   : > { %757 = vset.pattern.permute.xlu1 %v876_v30 }
  0x75   : > { %473 = vperm.xlu1 %757, %v971_v6  }
  0x79   : > { %759 = vset.pattern.permute.xlu1 %v877_v31 }
  0x7a   : > { %509 = vperm.xlu1 %759, %v971_v6  }
  0x7e   : > { %760 = vset.pattern.permute.xlu1 %v878_v32 }
  0x7f   : > { %527 = vperm.xlu1 %760, %v971_v6  }
  0x83   : > { %762 = vset.pattern.permute.xlu1 %v879_v33 }
  0x84   : > { %563 = vperm.xlu1 %762, %v971_v6  }
  0x88   : > { %763 = vset.pattern.permute.xlu1 %v880_v34 }
  0x89   : > { %581 = vperm.xlu1 %763, %v971_v6  }
  0x8d   : > { %765 = vset.pattern.permute.xlu1 %v881_v35 }
  0x8e   : > { %76 = vperm.xlu1 %765, %v971_v6  }
  0xae   : > { %v83_v38 = vpop.permute.xlu0 %82  ;;  %v119_v41 = vpop.permute.xlu1 %118 }
  0xaf   : > { %v85_v39 = vmul.f32 %v83_v38, %v1008_v36  ;;  %v86_v40 = vmul.f32 %v83_v38, %v1011_v37  ;;  %v121_v46 = vmul.f32 %v119_v41, %v1008_v36  ;;  %v122_v47 = vmul.f32 %v119_v41, %v1011_v37 }
  0xb1   : > { %91 = vrot.lane.b32.xlu0 %v86_v40, %s882_s11  ;;  %89 = vrot.lane.b32.xlu1 %v85_v39, %s882_s11  ;;  %s908_s11 = smov 101  }
  0xb3   : > { %v101_v42 = vpop.permute.xlu0 %100  ;;  %v137_v45 = vpop.permute.xlu1 %136 }
  0xb4   : > { %v103_v43 = vmul.f32 %v101_v42, %v1008_v36  ;;  %v104_v44 = vmul.f32 %v101_v42, %v1011_v37  ;;  %v139_v48 = vmul.f32 %v137_v45, %v1008_v36  ;;  %v140_v49 = vmul.f32 %v137_v45, %v1011_v37 }
  0xb6   : > { %109 = vrot.lane.b32.xlu0 %v104_v44, %s883_s12  ;;  %107 = vrot.lane.b32.xlu1 %v103_v43, %s883_s12  ;;  %s909_s12 = smov 100  }
  0xb8   : > { %v155_v50 = vpop.permute.xlu1 %154  ;;  %v173_v53 = vpop.permute.xlu0 %172 }
  0xb9   : > { %v157_v51 = vmul.f32 %v155_v50, %v1008_v36  ;;  %v158_v52 = vmul.f32 %v155_v50, %v1011_v37  ;;  %v175_v55 = vmul.f32 %v173_v53, %v1008_v36  ;;  %v176_v56 = vmul.f32 %v173_v53, %v1011_v37 }
  0xba   : > { %127 = vrot.lane.b32.xlu0 %v122_v47, %s884_s13  ;;  %125 = vrot.lane.b32.xlu1 %v121_v46, %s884_s13  ;;  %s910_s13 = smov 99  }
  0xbd   : > { %v191_v54 = vpop.permute.xlu1 %190  ;;  %v227_v62 = vpop.permute.xlu0 %226 }
  0xbe   : > { %145 = vrot.lane.b32.xlu0 %v140_v49, %s885_s14  ;;  %143 = vrot.lane.b32.xlu1 %v139_v48, %s885_s14  ;;  %v193_v57 = vmul.f32 %v191_v54, %v1008_v36  ;;  %v194_v58 = vmul.f32 %v191_v54, %v1011_v37  ;;  %v229_v0 = vmul.f32 %v227_v62, %v1008_v36  ;;  %s911_s14 = smov 98  }
  0xbf   : > { %v230_v1 = vmul.f32 %v227_v62, %v1011_v37 }
  0xc2   : > { %163 = vrot.lane.b32.xlu0 %v158_v52, %s886_s15  ;;  %161 = vrot.lane.b32.xlu1 %v157_v51, %s886_s15  ;;  %v209_v59 = vpop.permute.xlu1 %208  ;;  %v281_v8 = vpop.permute.xlu0 %280  ;;  %s912_s15 = smov 15  }
  0xc3   : > { %v211_v60 = vmul.f32 %v209_v59, %v1008_v36  ;;  %v212_v61 = vmul.f32 %v209_v59, %v1011_v37  ;;  %v283_v9 = vmul.f32 %v281_v8, %v1008_v36  ;;  %v284_v10 = vmul.f32 %v281_v8, %v1011_v37 }
  0xc6   : > { %181 = vrot.lane.b32.xlu0 %v176_v56, %s887_s16  ;;  %179 = vrot.lane.b32.xlu1 %v175_v55, %s887_s16  ;;  %s625_s16 = scalar_lea.vmem [#allocation8], %s968_s6 }
  0xc7   : > { %v245_v63 = vpop.permute.xlu1 %244  ;;  %v335_v17 = vpop.permute.xlu0 %334 }
  0xc8   : > { %v247_v3 = vmul.f32 %v245_v63, %v1008_v36  ;;  %v248_v4 = vmul.f32 %v245_v63, %v1011_v37  ;;  %v337_v19 = vmul.f32 %v335_v17, %v1011_v37 }
  0xca   : > { %199 = vrot.lane.b32.xlu0 %v194_v58, %s888_s17  ;;  %197 = vrot.lane.b32.xlu1 %v193_v57, %s888_s17  ;;  %s913_s17 = smov (%p60_p2), [#allocation8]  }
  0xcc   : > { %v263_v2 = vpop.permute.xlu1 %262  ;;  %v384_v24 = vpop.permute.xlu0 %383 }
  0xcd   : > { %v265_v6 = vmul.f32 %v263_v2, %v1008_v36  ;;  %v266_v7 = vmul.f32 %v263_v2, %v1011_v37  ;;  %v386_v27 = vmul.f32 %v384_v24, %v1011_v37  ;;  %v387_v28 = vmul.f32 %v384_v24, %v1044_v20 }
  0xce   : > { %217 = vrot.lane.b32.xlu0 %v212_v61, %s889_s18  ;;  %215 = vrot.lane.b32.xlu1 %v211_v60, %s889_s18  ;;  %s632_s18 = sshll.u32 (%p60_p2), %s913_s17, 4  ;;  %s633_s18 = int_to_ptr.vmem [resolvable:$true] %s632_s18 }
  0xcf   :  { %p815_p4 = scmp.lt.s32.totalorder (%p60_p2), %s633_s18, %s633_s18 }
  0xd1   : > { %v299_v5 = vpop.permute.xlu1 %298  ;;  %v438_v33 = vpop.permute.xlu0 %437 }
  0xd2   : > { %235 = vrot.lane.b32.xlu0 %v230_v1, %s890_s21  ;;  %233 = vrot.lane.b32.xlu1 %v229_v0, %s890_s21  ;;  %v301_v12 = vmul.f32 %v299_v5, %v1008_v36  ;;  %v302_v13 = vmul.f32 %v299_v5, %v1011_v37  ;;  %v440_v38 = vmul.f32 %v438_v33, %v1011_v37  ;;  %s810_s21 = scalar_lea.vmem (%p60_p2), %s633_s18, 384 }
  0xd3   : > { %v441_v39 = vmul.f32 %v438_v33, %v1044_v20  ;;  %p811_p3 = scmp.ne.s32.totalorder (%p60_p2), %s633_s18, %s810_s21  ;;  %p816_p5 = scmp.lt.s32.totalorder (%p60_p2), %s810_s21, %s810_s21 }
  0xd5   :  { %p817_p6 = por (%p60_p2), %p816_p5, %p815_p4 }
  0xd6   : > { %253 = vrot.lane.b32.xlu0 %v248_v4, %s891_s22  ;;  %251 = vrot.lane.b32.xlu1 %v247_v3, %s891_s22  ;;  %v317_v11 = vpop.permute.xlu1 %316  ;;  %v492_v44 = vpop.permute.xlu0 %491 }
  0xd7   : > { %v319_v15 = vmul.f32 %v317_v11, %v1008_v36  ;;  %v320_v16 = vmul.f32 %v317_v11, %v1011_v37  ;;  %v494_v47 = vmul.f32 %v492_v44, %v1011_v37  ;;  %v495_v48 = vmul.f32 %v492_v44, %v1044_v20  ;;  %p818_p7 = pnand (%p60_p2), %p817_p6, %p811_p3 }
  0xda   : > { %271 = vrot.lane.b32.xlu0 %v266_v7, %s892_s23  ;;  %269 = vrot.lane.b32.xlu1 %v265_v6, %s892_s23 }
  0xdb   : > { %v348_v14 = vpop.permute.xlu1 %347  ;;  %v546_v52 = vpop.permute.xlu0 %545 }
  0xdc   : > { %v350_v18 = vmul.f32 %v348_v14, %v1011_v37  ;;  %v351_v22 = vmul.f32 %v348_v14, %v1044_v20  ;;  %v548_v55 = vmul.f32 %v546_v52, %v1011_v37  ;;  %v549_v57 = vmul.f32 %v546_v52, %v1044_v20 }
  0xde   : > { %289 = vrot.lane.b32.xlu0 %v284_v10, %s893_s24  ;;  %287 = vrot.lane.b32.xlu1 %v283_v9, %s893_s24 }
  0xe0   : > { %v366_v21 = vpop.permute.xlu1 %365  ;;  %v600_v61 = vpop.permute.xlu0 %599 }
  0xe1   : > { %v368_v23 = vmul.f32 %v366_v21, %v1011_v37  ;;  %v369_v26 = vmul.f32 %v366_v21, %v1044_v20  ;;  %v602_v0 = vmul.f32 %v600_v61, %v1011_v37  ;;  %v603_v2 = vmul.f32 %v600_v61, %v1044_v20 }
  0xe2   : > { %307 = vrot.lane.b32.xlu0 %v302_v13, %s894_s25  ;;  %305 = vrot.lane.b32.xlu1 %v301_v12, %s894_s25 }
  0xe5   : > { %v402_v25 = vpop.permute.xlu1 %401 }
  0xe6   : > { %325 = vrot.lane.b32.xlu0 %v320_v16, %s895_s26  ;;  %323 = vrot.lane.b32.xlu1 %v319_v15, %s895_s26  ;;  %v404_v29 = vmul.f32 %v402_v25, %v1011_v37  ;;  %v405_v31 = vmul.f32 %v402_v25, %v1044_v20 }
  0xea   : > { %354 = vrot.lane.b32.xlu0 %v350_v18, %s896_s27  ;;  %339 = vrot.lane.b32.xlu1 %v337_v19, %s897_s28  ;;  %v420_v30 = vpop.permute.xlu1 %419 }
  0xeb   : > { %v422_v32 = vmul.f32 %v420_v30, %v1011_v37  ;;  %v423_v35 = vmul.f32 %v420_v30, %v1044_v20 }
  0xee   : > { %372 = vrot.lane.b32.xlu0 %v368_v23, %s898_s29  ;;  %356 = vrot.lane.b32.xlu1 %v351_v22, %s896_s27 }
  0xef   : > { %v456_v34 = vpop.permute.xlu1 %455 }
  0xf0   : > { %v458_v40 = vmul.f32 %v456_v34, %v1011_v37  ;;  %v459_v42 = vmul.f32 %v456_v34, %v1044_v20 }
  0xf2   : > { %374 = vrot.lane.b32.xlu1 %v369_v26, %s898_s29  ;;  %390 = vrot.lane.b32.xlu0 %v386_v27, %s899_s30 }
  0xf4   : > { %v474_v41 = vpop.permute.xlu1 %473 }
  0xf5   : > { %v476_v43 = vmul.f32 %v474_v41, %v1011_v37  ;;  %v477_v46 = vmul.f32 %v474_v41, %v1044_v20 }
  0xf6   : > { %392 = vrot.lane.b32.xlu1 %v387_v28, %s899_s30  ;;  %408 = vrot.lane.b32.xlu0 %v404_v29, %s900_s3 }
  0xf9   : > { %v510_v45 = vpop.permute.xlu1 %509 }
  0xfa   : > { %410 = vrot.lane.b32.xlu1 %v405_v31, %s900_s3  ;;  %426 = vrot.lane.b32.xlu0 %v422_v32, %s901_s4  ;;  %v512_v49 = vmul.f32 %v510_v45, %v1011_v37  ;;  %v513_v53 = vmul.f32 %v510_v45, %v1044_v20 }
  0xfe   : > { %428 = vrot.lane.b32.xlu1 %v423_v35, %s901_s4  ;;  %444 = vrot.lane.b32.xlu0 %v440_v38, %s902_s0  ;;  %v528_v50 = vpop.permute.xlu1 %527 }
  0xff   : > { %v530_v51 = vmul.f32 %v528_v50, %v1011_v37  ;;  %v531_v56 = vmul.f32 %v528_v50, %v1044_v20 }
 0x102   : > { %446 = vrot.lane.b32.xlu1 %v441_v39, %s902_s0  ;;  %462 = vrot.lane.b32.xlu0 %v458_v40, %s903_s5 }
 0x103   : > { %v564_v54 = vpop.permute.xlu1 %563 }
 0x104   : > { %v566_v58 = vmul.f32 %v564_v54, %v1011_v37  ;;  %v567_v62 = vmul.f32 %v564_v54, %v1044_v20 }
 0x106   : > { %464 = vrot.lane.b32.xlu1 %v459_v42, %s903_s5  ;;  %480 = vrot.lane.b32.xlu0 %v476_v43, %s904_s7 }
 0x108   : > { %v582_v59 = vpop.permute.xlu1 %581 }
 0x109   : > { %v584_v60 = vmul.f32 %v582_v59, %v1011_v37  ;;  %v585_v1 = vmul.f32 %v582_v59, %v1044_v20 }
 0x10a   : > { %482 = vrot.lane.b32.xlu1 %v477_v46, %s904_s7  ;;  %498 = vrot.lane.b32.xlu0 %v494_v47, %s905_s8 }
 0x10d   : > { %v77_v63 = vpop.permute.xlu1 %76 }
 0x10e   : > { %500 = vrot.lane.b32.xlu1 %v495_v48, %s905_s8  ;;  %516 = vrot.lane.b32.xlu0 %v512_v49, %s906_s9  ;;  %v79_v28 = vmul.f32 %v77_v63, %v1008_v36  ;;  %v80_v42 = vmul.f32 %v77_v63, %v1011_v37 }
 0x112   : > { %518 = vrot.lane.b32.xlu1 %v513_v53, %s906_s9  ;;  %534 = vrot.lane.b32.xlu0 %v530_v51, %s907_s10 }
 0x116   : > { %536 = vrot.lane.b32.xlu1 %v531_v56, %s907_s10  ;;  %552 = vrot.lane.b32.xlu0 %v548_v55, %s908_s11 }
 0x11a   : > { %554 = vrot.lane.b32.xlu1 %v549_v57, %s908_s11  ;;  %570 = vrot.lane.b32.xlu0 %v566_v58, %s909_s12 }
 0x11e   : > { %572 = vrot.lane.b32.xlu1 %v567_v62, %s909_s12  ;;  %588 = vrot.lane.b32.xlu0 %v584_v60, %s910_s13 }
 0x122   : > { %590 = vrot.lane.b32.xlu1 %v585_v1, %s910_s13  ;;  %606 = vrot.lane.b32.xlu0 %v602_v0, %s911_s14 }
 0x123   : > { %v90_v3 = vpop.permute.xlu1 %89  ;;  %v92_v4 = vpop.permute.xlu0 %91 }
 0x124   : > { %v94_v27 = vsel %vm93_vm2, %v90_v3, %v92_v4  ;;  %v98_v49 = vadd.f32 %v92_v4, %v80_v42  ;;  %vm376_vm2 = vcmask 908288  }
 0x125   : > { %v97_v32 = vadd.f32 %v94_v27, %v79_v28 }
 0x126   : > { %608 = vrot.lane.b32.xlu1 %v603_v2, %s911_s14 }
 0x128   : > { %v108_v5 = vpop.permute.xlu1 %107  ;;  %v110_v6 = vpop.permute.xlu0 %109 }
 0x129   : > { %v112_v29 = vsel %vm111_vm3, %v108_v5, %v110_v6  ;;  %v116_v54 = vadd.f32 %v110_v6, %v98_v49  ;;  %vm394_vm3 = vcmask 900096  }
 0x12a   : > { %v115_v34 = vadd.f32 %v112_v29, %v97_v32 }
 0x12c   : > { %v126_v7 = vpop.permute.xlu1 %125  ;;  %v128_v8 = vpop.permute.xlu0 %127 }
 0x12d   : > { %v130_v33 = vsel %vm129_vm4, %v126_v7, %v128_v8  ;;  %v134_v56 = vadd.f32 %v128_v8, %v116_v54  ;;  %vm412_vm4 = vcmask 891904  }
 0x12e   : > { %v133_v40 = vadd.f32 %v130_v33, %v115_v34 }
 0x130   : > { %v144_v9 = vpop.permute.xlu1 %143  ;;  %v1075_v10 = vpop.permute.xlu0 %145 }
 0x131   : > { %v148_v35 = vsel %vm147_vm5, %v144_v9, %v1075_v10  ;;  %v152_v61 = vadd.f32 %v1075_v10, %v134_v56  ;;  %vm430_vm5 = vcmask 883712  }
 0x132   : > { %v151_v36 = vadd.f32 %v148_v35, %v133_v40 }
 0x134   : > { %v162_v11 = vpop.permute.xlu1 %161  ;;  %v1077_v12 = vpop.permute.xlu0 %163 }
 0x135   : > { %v166_v41 = vsel %vm165_vm6, %v162_v11, %v1077_v12  ;;  %v170_v0 = vadd.f32 %v1077_v12, %v152_v61  ;;  %vm448_vm6 = vcmask 875520  }
 0x136   : > { %v169_v46 = vadd.f32 %v166_v41, %v151_v36 }
 0x138   : > { %v180_v13 = vpop.permute.xlu1 %179  ;;  %v1079_v14 = vpop.permute.xlu0 %181 }
 0x139   : > { %v184_v43 = vsel %vm183_vm7, %v180_v13, %v1079_v14  ;;  %v188_v5 = vadd.f32 %v1079_v14, %v170_v0  ;;  %vm466_vm7 = vcmask 867328  }
 0x13a   : > { %v187_v48 = vadd.f32 %v184_v43, %v169_v46 }
 0x13c   : > { %v198_v15 = vpop.permute.xlu1 %197  ;;  %v1081_v16 = vpop.permute.xlu0 %199 }
 0x13d   : > { %v202_v47 = vsel %vm201_vm8, %v198_v15, %v1081_v16  ;;  %v206_v8 = vadd.f32 %v1081_v16, %v188_v5  ;;  %vm484_vm8 = vcmask 859136  }
 0x13e   : > { %v205_v53 = vadd.f32 %v202_v47, %v187_v48 }
 0x140   : > { %v216_v17 = vpop.permute.xlu1 %215  ;;  %v1083_v18 = vpop.permute.xlu0 %217 }
 0x141   : > { %v220_v50 = vsel %vm219_vm9, %v216_v17, %v1083_v18  ;;  %v224_v12 = vadd.f32 %v1083_v18, %v206_v8  ;;  %vm502_vm9 = vcmask 850944  }
 0x142   : > { %v223_v55 = vadd.f32 %v220_v50, %v205_v53 }
 0x144   : > { %v234_v19 = vpop.permute.xlu1 %233  ;;  %v1085_v20 = vpop.permute.xlu0 %235 }
 0x145   : > { %v238_v37 = vsel %vm237_vm10, %v234_v19, %v1085_v20  ;;  %v242_v17 = vadd.f32 %v1085_v20, %v224_v12  ;;  %vm520_vm10 = vcmask 842752  }
 0x146   : > { %v241_v60 = vadd.f32 %v238_v37, %v223_v55 }
 0x148   : > { %v252_v21 = vpop.permute.xlu1 %251  ;;  %v1087_v22 = vpop.permute.xlu0 %253 }
 0x149   : > { %v256_v57 = vsel %vm255_vm11, %v252_v21, %v1087_v22  ;;  %vm538_vm11 = vcmask 834560  }
 0x14a   : > { %v259_v63 = vadd.f32 %v256_v57, %v241_v60 }
 0x14c   : > { %v270_v23 = vpop.permute.xlu1 %269  ;;  %v1089_v24 = vpop.permute.xlu0 %271 }
 0x14d   : > { %v274_v62 = vsel %vm273_vm12, %v270_v23, %v1089_v24  ;;  %v260_v23 = vadd.f32 %v1087_v22, %v242_v17  ;;  %vm556_vm12 = vcmask 826368  }
 0x14e   : > { %v277_v4 = vadd.f32 %v274_v62, %v259_v63 }
 0x150   : > { %v288_v25 = vpop.permute.xlu1 %287  ;;  %v1091_v26 = vpop.permute.xlu0 %289 }
 0x151   : > { %v292_v1 = vsel %vm291_vm13, %v288_v25, %v1091_v26  ;;  %v278_v25 = vadd.f32 %v1089_v24, %v260_v23  ;;  %vm574_vm13 = vcmask 818176  }
 0x152   : > { %v295_v7 = vadd.f32 %v292_v1, %v277_v4 }
 0x153   : > { %v296_v16 = vadd.f32 %v1091_v26, %v278_v25 }
 0x154   : > { %v306_v30 = vpop.permute.xlu1 %305  ;;  %v1094_v31 = vpop.permute.xlu0 %307 }
 0x155   : > { %v310_v6 = vsel %vm309_vm14, %v306_v30, %v1094_v31  ;;  %v314_v30 = vadd.f32 %v1094_v31, %v296_v16  ;;  %vm592_vm14 = vcmask 809984  }
 0x156   : > { %v313_v13 = vadd.f32 %v310_v6, %v295_v7 }
 0x158   : > { %v324_v38 = vpop.permute.xlu1 %323  ;;  %v1097_v39 = vpop.permute.xlu0 %325 }
 0x159   : > { %v328_v9 = vsel %vm327_vm15, %v324_v38, %v1097_v39  ;;  %v332_v33 = vadd.f32 %v1097_v39, %v314_v30  ;;  %vm610_vm15 = vcmask 801792  }
 0x15a   : > { %v331_v15 = vadd.f32 %v328_v9, %v313_v13 }
 0x15c   : > { %v340_v44 = vpop.permute.xlu1 %339  ;;  %v355_v45 = vpop.permute.xlu0 %354 }
 0x15d   : > { %v342_v14 = vadd.f32 %v340_v44, %v331_v15  ;;  %v343_v35 = vadd.f32 %v340_v44, %v332_v33 }
 0x15f   : > { %v362_v29 = vadd.f32 %v355_v45, %v342_v14 }
 0x160   : > { %v357_v51 = vpop.permute.xlu1 %356  ;;  %v373_v52 = vpop.permute.xlu0 %372 }
 0x161   : > { %v359_v20 = vsel %vm358_vm0, %v355_v45, %v357_v51  ;;  %v380_v34 = vadd.f32 %v373_v52, %v362_v29 }
 0x162   : > { %v363_v41 = vadd.f32 %v359_v20, %v343_v35 }
 0x164   : > { %v375_v58 = vpop.permute.xlu1 %374  ;;  %v391_v59 = vpop.permute.xlu0 %390 }
 0x165   : > { %v377_v24 = vsel %vm376_vm2, %v373_v52, %v375_v58  ;;  %v398_v40 = vadd.f32 %v391_v59, %v380_v34 }
 0x166   : > { %v381_v42 = vadd.f32 %v377_v24, %v363_v41 }
 0x168   : > { %v393_v2 = vpop.permute.xlu1 %392  ;;  %v409_v3 = vpop.permute.xlu0 %408 }
 0x169   : > { %v395_v26 = vsel %vm394_vm3, %v391_v59, %v393_v2  ;;  %v416_v36 = vadd.f32 %v409_v3, %v398_v40 }
 0x16a   : > { %v399_v39 = vadd.f32 %v395_v26, %v381_v42 }
 0x16c   : > { %v411_v10 = vpop.permute.xlu1 %410  ;;  %v427_v11 = vpop.permute.xlu0 %426 }
 0x16d   : > { %v413_v46 = vsel %vm412_vm4, %v409_v3, %v411_v10  ;;  %v434_v47 = vadd.f32 %v427_v11, %v416_v36 }
 0x16e   : > { %v417_v44 = vadd.f32 %v413_v46, %v399_v39 }
 0x170   : > { %v429_v19 = vpop.permute.xlu1 %428  ;;  %v445_v21 = vpop.permute.xlu0 %444 }
 0x171   : > { %v431_v45 = vsel %vm430_vm5, %v427_v11, %v429_v19  ;;  %v452_v48 = vadd.f32 %v445_v21, %v434_v47 }
 0x172   : > { %v435_v53 = vadd.f32 %v431_v45, %v417_v44 }
 0x174   : > { %v447_v27 = vpop.permute.xlu1 %446  ;;  %v463_v28 = vpop.permute.xlu0 %462 }
 0x175   : > { %v449_v51 = vsel %vm448_vm6, %v445_v21, %v447_v27  ;;  %v470_v52 = vadd.f32 %v463_v28, %v452_v48 }
 0x176   : > { %v453_v55 = vadd.f32 %v449_v51, %v435_v53 }
 0x178   : > { %v465_v32 = vpop.permute.xlu1 %464  ;;  %v481_v18 = vpop.permute.xlu0 %480 }
 0x179   : > { %v467_v54 = vsel %vm466_vm7, %v463_v28, %v465_v32  ;;  %v488_v37 = vadd.f32 %v481_v18, %v470_v52 }
 0x17a   : > { %v471_v60 = vadd.f32 %v467_v54, %v453_v55 }
 0x17c   : > { %v483_v22 = vpop.permute.xlu1 %482  ;;  %v499_v38 = vpop.permute.xlu0 %498 }
 0x17d   : > { %v485_v58 = vsel %vm484_vm8, %v481_v18, %v483_v22  ;;  %v506_v59 = vadd.f32 %v499_v38, %v488_v37 }
 0x17e   : > { %v489_v63 = vadd.f32 %v485_v58, %v471_v60 }
 0x180   : > { %v501_v31 = vpop.permute.xlu1 %500  ;;  %v517_v43 = vpop.permute.xlu0 %516 }
 0x181   : > { %v503_v61 = vsel %vm502_vm9, %v499_v38, %v501_v31  ;;  %v524_v62 = vadd.f32 %v517_v43, %v506_v59 }
 0x182   : > { %v507_v4 = vadd.f32 %v503_v61, %v489_v63 }
 0x184   : > { %v519_v49 = vpop.permute.xlu1 %518  ;;  %v535_v50 = vpop.permute.xlu0 %534 }
 0x185   : > { %v521_v2 = vsel %vm520_vm10, %v517_v43, %v519_v49  ;;  %v542_v3 = vadd.f32 %v535_v50, %v524_v62 }
 0x186   : > { %v525_v7 = vadd.f32 %v521_v2, %v507_v4 }
 0x188   : > { %v537_v56 = vpop.permute.xlu1 %536  ;;  %v553_v57 = vpop.permute.xlu0 %552 }
 0x189   : > { %v539_v5 = vsel %vm538_vm11, %v535_v50, %v537_v56  ;;  %v560_v6 = vadd.f32 %v553_v57, %v542_v3 }
 0x18a   : > { %v543_v13 = vadd.f32 %v539_v5, %v525_v7 }
 0x18c   : > { %v555_v0 = vpop.permute.xlu1 %554  ;;  %v571_v1 = vpop.permute.xlu0 %570 }
 0x18d   : > { %v557_v10 = vsel %vm556_vm12, %v553_v57, %v555_v0  ;;  %v578_v11 = vadd.f32 %v571_v1, %v560_v6 }
 0x18e   : > { %v561_v17 = vadd.f32 %v557_v10, %v543_v13 }
 0x190   : > { %v573_v8 = vpop.permute.xlu1 %572  ;;  %v589_v9 = vpop.permute.xlu0 %588 }
 0x191   : > { %v575_v12 = vsel %vm574_vm13, %v571_v1, %v573_v8  ;;  %v596_v15 = vadd.f32 %v589_v9, %v578_v11 }
 0x192   : > { %v579_v25 = vadd.f32 %v575_v12, %v561_v17 }
 0x194   : > { %v591_v19 = vpop.permute.xlu1 %590  ;;  %v607_v21 = vpop.permute.xlu0 %606 }
 0x195   : > { %v593_v23 = vsel %vm592_vm14, %v589_v9, %v591_v19  ;;  %v614_v14 = vadd.f32 %v607_v21, %v596_v15 }
 0x196   : > { %v597_v27 = vadd.f32 %v593_v23, %v579_v25 }
 0x197   : > { %618 = vrot.lane.b32.xlu0 %v614_v14, %s912_s15 }
 0x198   : > { %v609_v28 = vpop.permute.xlu1 %608 }
 0x199   : > { %v611_v16 = vsel %vm610_vm15, %v607_v21, %v609_v28 }
 0x19a   : > { %v615_v29 = vadd.f32 %v611_v16, %v597_v27 }
 0x19c   : > { %620 = vrot.lane.b32.xlu1 %v615_v29, %s912_s15 }
 0x209   : > { %v619_v30 = vpop.permute.xlu0 %618 }
 0x20a   :  { %62 = sbr.rel (!%p60_p2) target bundleno = 44 (0x2c), region = 50 }
 0x20e   : > { %v621_v32 = vpop.permute.xlu1 %620 }
 0x20f   : > { %v623_v18 = vsel %vm48_vm1, %v619_v30, %v621_v32 }
 0x210   : > { %626 = vst [vmem:[%s625_s16] sm:$0xff] %v623_v18 }
 0x211   :  { %821 = shalt.err (!%p818_p7)
}
 0x212   :  { %s822_s6 = scalar_lea.hbm %s1143_s2, 384 }
 0x213   :  { %p823_p8 = scmp.ne.s32.totalorder %s1143_s2, %s822_s6  ;;  %p826_p9 = scmp.lt.u32.totalorder %s822_s6, %s1143_s2 }
 0x215   :  { %p828_p10 = pnand %p826_p9, %p823_p8 }
 0x217   :  { %831 = shalt.err (!%p828_p10)
}
 0x218   :  { %638 = dma.vmem_to_hbm [thread:$0]  %s633_s18, 384, %s1143_s2, [#allocation5], %s847_s19, %s847_s19, %s848_s20  }
 0x219   :  { %840 = dma.done.wait [#allocation5], 384  }
 0x21a   :  { %841 = vsyncadd [#allocation5], 4294966912 }
 0x21b   :  { %642 = vsyncpa [#allocation4], 1 }
 0x21c   :  { %643 = vsyncpa [#allocation7], 1 }
 0x21d   :  { %644 = vsyncpa [#allocation5], 1 }

</bundles_post_ra>
